<compile_context>
chip_gen: v6e
topology: v6e:2x2x1
jax: 0.10.0
libtpu: 0.0.40
codegen_flags: <defaults>
</compile_context>

<pallas_src>
import functools

import numpy as np
import jax
import jax.numpy as jnp
from jax.experimental import pallas as pl
from jax.experimental.pallas import tpu as pltpu

DIM_X = 4
_SLAB_ROWS = 8  # sublane quantum for f32


def _build_cartpole_params_np():
    """Deterministically build the A (4x4) and B (4x1) system matrices (numpy)."""
    mb = 1.0
    mt = 0.1
    L = 1.0
    rho = 0.1
    r = 1.0
    E = 200 * 0.1
    I = np.pi / 4 * r ** 4

    b = np.array([[0.0, 0.0], [0.0, 0.9]], dtype=np.float64)
    K = np.array([[0.0, 0.0], [0.0, 4 * E * I / L ** 3]], dtype=np.float64)
    M = np.array(
        [
            [mb + mt + rho * L, mt + rho * L / 3],
            [mt + rho * L / 3, mt + rho * L / 5],
        ],
        dtype=np.float64,
    )
    Minv = np.linalg.inv(M)

    top_row = np.concatenate([np.zeros((2, 2)), np.eye(2)], axis=1)
    bottom_row = np.concatenate([-Minv @ K, -Minv @ b], axis=1)
    A = np.concatenate([top_row, bottom_row], axis=0).astype(np.float32)   # (4, 4)

    B = np.concatenate(
        [np.zeros((2, 1)), Minv @ np.array([[1.0], [0.0]])], axis=0
    ).astype(np.float32)                                                   # (4, 1)

    return A, B


_A_NP, _B_NP = _build_cartpole_params_np()
# Trace-time scalar constants baked into the kernel (no VMEM/HBM traffic for A/B).
_A_CONST = [[float(_A_NP[j, k]) for k in range(DIM_X)] for j in range(DIM_X)]
_B_CONST = [float(_B_NP[j, 0]) for j in range(DIM_X)]
_B_JNP = jnp.asarray(_B_NP)                                                # (4, 1)


def _cartpole_kernel(slab_ref, out_ref):
    # slab_ref: (8, TILE)  -- rows 0..3 = x (state on sublanes, batch on lanes),
    #                         row  4    = u,
    #                         rows 5..7 = padding (ignored).
    # out_ref:  (8, TILE)  -- rows 0..3 = dxdt, rows 4..7 = fx.
    s = slab_ref[...]                                   # (8, TILE) f32
    x_rows = [s[j:j + 1, :] for j in range(DIM_X)]      # static sublane slices
    u = s[DIM_X:DIM_X + 1, :]                           # (1, TILE)

    fx_rows = []
    dx_rows = []
    for j in range(DIM_X):
        # fx[j, :] = sum_k A[j, k] * x[k, :]   (VPU scalar*vector FMAs; zeros skipped)
        acc = None
        for k in range(DIM_X):
            c = _A_CONST[j][k]
            if c == 0.0:
                continue
            term = x_rows[k] if c == 1.0 else c * x_rows[k]
            acc = term if acc is None else acc + term
        if acc is None:
            acc = jnp.zeros_like(u)
        fx_rows.append(acc)

        bj = _B_CONST[j]
        dx_rows.append(acc if bj == 0.0 else acc + bj * u)

    # Single lane-dense, full-tile (8, TILE) store: rows 0-3 dxdt, rows 4-7 fx.
    out_ref[...] = jnp.concatenate(dx_rows + fx_rows, axis=0)


def _round_up(a, b):
    return ((a + b - 1) // b) * b


def _choose_tiling(n, lane_tile):
    """Pick (tile, num_blocks, n_pad) with tile a 128-multiple divisor of n_pad."""
    # Robustness: lane_tile must be a positive multiple of 128.
    lane_tile = max(128, (int(lane_tile) // 128) * 128)
    n128 = _round_up(max(int(n), 1), 128)          # pad batch only to 128
    tile = min(lane_tile, n128)
    num_blocks = -(-n128 // tile)
    # Prefer >= 2 blocks so the "parallel" grid axis can shard across the two
    # v7x TensorCores; extra grid steps are ~0.35 us -> neutral on v5e/v6e.
    if num_blocks == 1 and n128 >= 256:
        num_blocks = 2
    tile = _round_up(-(-n128 // num_blocks), 128)
    n_pad = tile * num_blocks
    return tile, num_blocks, n_pad


@functools.partial(jax.jit, static_argnames=("lane_tile",))
def _forward_impl(xe, ue, lane_tile):
    N = xe.shape[0]
    tile, num_blocks, n_pad = _choose_tiling(N, lane_tile)

    # Build the packed (8, n_pad) input slab in one fused wrapper op:
    #   rows 0-3 = xe[:, :4]^T, row 4 = ue^T, rows 5-7 / lanes >= N = zero pad.
    x4 = xe[:, :DIM_X].astype(jnp.float32)               # (N, 4)
    u1 = ue.reshape(N, 1).astype(jnp.float32)            # (N, 1)
    xu_t = jnp.concatenate([x4, u1], axis=1).T           # (5, N)
    in_slab = jnp.pad(xu_t, ((0, _SLAB_ROWS - (DIM_X + 1)), (0, n_pad - N)))

    out_slab = pl.pallas_call(
        _cartpole_kernel,
        out_shape=jax.ShapeDtypeStruct((_SLAB_ROWS, n_pad), jnp.float32),
        grid=(num_blocks,),
        in_specs=[pl.BlockSpec((_SLAB_ROWS, tile), lambda i: (0, i))],
        out_specs=pl.BlockSpec((_SLAB_ROWS, tile), lambda i: (0, i)),
        compiler_params=pltpu.CompilerParams(
            dimension_semantics=("parallel",),
        ),
    )(in_slab)

    # Single fused transpose + split back to the PyTorch (N, 4) orientation.
    out_t = out_slab[:, :N].T                             # (N, 8)
    dxdt = out_t[:, :DIM_X]
    fx = out_t[:, DIM_X:2 * DIM_X]

    # gx is a pure broadcast of the constant B (no compute) -> plain-JAX glue.
    # Consumers that only need B should use the constant instead of materializing.
    gx = jnp.broadcast_to(_B_JNP[None, :, :], (N, DIM_X, 1))
    return dxdt, fx, gx


def cartpole_forward(xe, ue, *, lane_tile=32768):
    """Pallas implementation of CartPole.forward. Returns (dxdt, fx, gx)."""
    return _forward_impl(xe, ue, lane_tile=lane_tile)


def _reference_forward(xe, ue):
    """Pure-JAX reference mirroring the PyTorch forward."""
    A = jnp.asarray(_A_NP)
    B = _B_JNP
    x = xe[..., :DIM_X].astype(jnp.float32)
    ue2 = ue.reshape(xe.shape[0], 1).astype(jnp.float32)
    fx = jnp.einsum("ij,nj->ni", A, x)
    dxdt = fx + jnp.einsum("ij,nj->ni", B, ue2)
    gx = jnp.broadcast_to(B[None, :, :], (xe.shape[0], DIM_X, 1))
    return dxdt, fx, gx


def _check(N, dim_xe, key, lane_tile=32768):
    k_xe, k_ue = jax.random.split(key)
    xe = jax.random.normal(k_xe, (N, dim_xe), dtype=jnp.float32)
    ue = jax.random.normal(k_ue, (N, 1), dtype=jnp.float32)

    dxdt, fx, gx = cartpole_forward(xe, ue, lane_tile=lane_tile)
    jax.block_until_ready((dxdt, fx, gx))

    dxdt_r, fx_r, gx_r = _reference_forward(xe, ue)
    np.testing.assert_allclose(np.asarray(dxdt), np.asarray(dxdt_r), rtol=1e-5, atol=1e-5)
    np.testing.assert_allclose(np.asarray(fx), np.asarray(fx_r), rtol=1e-5, atol=1e-5)
    np.testing.assert_allclose(np.asarray(gx), np.asarray(gx_r), rtol=1e-5, atol=1e-5)


if __name__ == "__main__":
    key = jax.random.PRNGKey(0)
    k1, k2 = jax.random.split(key)

    # Small shape matching the module's usage (xe carries 2 extra features).
    _check(N=8, dim_xe=6, key=k1)
    # Non-multiple-of-128 batch: exercises pad-to-128 + 2-block tiling path.
    _check(N=300, dim_xe=6, key=k2, lane_tile=8192)

    print("KERNEL_OK")
</pallas_src>

<mosaic_0001>
module attributes {stable_mosaic.version = 11 : i64} {
  func.func @_cartpole_kernel(%arg0: i32, %arg1: memref<8x128xf32, #tpu.memory_space<vmem>>, %arg2: memref<8x128xf32, #tpu.memory_space<vmem>>) attributes {dimension_semantics = [#tpu.dimension_semantics<parallel>], iteration_bounds = array<i64: 1>, scalar_prefetch = 0 : i64, scratch_operands = 0 : i64, tpu.core_type = #tpu.core_type<tc>, window_params = [{transform_indices = @transform_0, window_bounds = array<i64: 8, 128>}, {transform_indices = @transform_1, window_bounds = array<i64: 8, 128>}]} {
    %c0 = arith.constant 0 : index
    %c0_0 = arith.constant 0 : index
    %0 = vector.load %arg1[%c0, %c0_0] : memref<8x128xf32, #tpu.memory_space<vmem>>, vector<8x128xf32>
    %1 = vector.extract_strided_slice %0 {offsets = [1, 0], sizes = [1, 128], strides = [1, 1]} : vector<8x128xf32> to vector<1x128xf32>
    %2 = vector.extract_strided_slice %0 {offsets = [2, 0], sizes = [1, 128], strides = [1, 1]} : vector<8x128xf32> to vector<1x128xf32>
    %3 = vector.extract_strided_slice %0 {offsets = [3, 0], sizes = [1, 128], strides = [1, 1]} : vector<8x128xf32> to vector<1x128xf32>
    %4 = vector.extract_strided_slice %0 {offsets = [4, 0], sizes = [1, 128], strides = [1, 1]} : vector<8x128xf32> to vector<1x128xf32>
    %cst = arith.constant 66.3716736 : f32
    %5 = vector.broadcast %cst : f32 to vector<1x128xf32>
    %6 = arith.mulf %5, %1 : vector<1x128xf32>
    %cst_1 = arith.constant 0.950704216 : f32
    %7 = vector.broadcast %cst_1 : f32 to vector<1x128xf32>
    %8 = arith.mulf %7, %3 : vector<1x128xf32>
    %9 = arith.addf %6, %8 : vector<1x128xf32>
    %cst_2 = arith.constant 0.950704216 : f32
    %10 = vector.broadcast %cst_2 : f32 to vector<1x128xf32>
    %11 = arith.mulf %10, %4 : vector<1x128xf32>
    %12 = arith.addf %9, %11 : vector<1x128xf32>
    %cst_3 = arith.constant -597.345093 : f32
    %13 = vector.broadcast %cst_3 : f32 to vector<1x128xf32>
    %14 = arith.mulf %13, %1 : vector<1x128xf32>
    %cst_4 = arith.constant -8.55633831 : f32
    %15 = vector.broadcast %cst_4 : f32 to vector<1x128xf32>
    %16 = arith.mulf %15, %3 : vector<1x128xf32>
    %17 = arith.addf %14, %16 : vector<1x128xf32>
    %cst_5 = arith.constant -1.05633807 : f32
    %18 = vector.broadcast %cst_5 : f32 to vector<1x128xf32>
    %19 = arith.mulf %18, %4 : vector<1x128xf32>
    %20 = arith.addf %17, %19 : vector<1x128xf32>
    %21 = tpu.concatenate %2, %3, %12, %20, %2, %3, %9, %17 in 0 : vector<1x128xf32>, vector<1x128xf32>, vector<1x128xf32>, vector<1x128xf32>, vector<1x128xf32>, vector<1x128xf32>, vector<1x128xf32>, vector<1x128xf32> -> vector<8x128xf32>
    %c0_6 = arith.constant 0 : index
    %c0_7 = arith.constant 0 : index
    %22 = vector.load %arg2[%c0_6, %c0_7] : memref<8x128xf32, #tpu.memory_space<vmem>>, vector<8x128xf32>
    tpu.vector_store %arg2[%c0_6, %c0_7], %21 {strides = array<i32>} : memref<8x128xf32, #tpu.memory_space<vmem>>, vector<8x128xf32>,
    return
  }
  func.func @transform_0(%arg0: i32) -> (i32, i32) {
    %c0_i32 = arith.constant 0 : i32
    %c0_i32_0 = arith.constant 0 : i32
    return %c0_i32, %arg0 : i32, i32
  }
  func.func @transform_1(%arg0: i32) -> (i32, i32) {
    %c0_i32 = arith.constant 0 : i32
    %c0_i32_0 = arith.constant 0 : i32
    return %c0_i32, %arg0 : i32, i32
  }
}

</mosaic_0001>

<bundles_post_ra>
// kernel: _forward_impl.1
= control target key start
LH: loop header
LB: loop body
LE: loop exit
PB: predicated region body
PF: predicated region fallthrough
CT: control target
= control target key end

     0   :  { %vm46_vm0 = vcmask 1041408   ;;  %vm48_vm1 = vcmask 1042432   ;;  %vm50_vm2 = vcmask 1043456   ;;  %vm52_vm3 = vcmask 1044480   ;;  %s79_s0 = inlined_call_operand.vmem [shape: f32[8,128], index: 0, kind: input, shape index: {}]   ;;  %s80_s1 = inlined_call_operand.vmem [shape: f32[8,128], index: 1, kind: output, shape index: {}]  }
   0x1   :  { %v8_v0 = vld [vmem:[%s79_s0] sm:$0xff]  ;;  %vm54_vm4 = vcmask 1045504   ;;  %vm56_vm5 = vcmask 1046528  }
   0x2   :  { %v9_v1 = vmul.f32 66.37167, %v8_v0  ;;  %v10_v2 = vmul.f32 0.9507042, %v8_v0  ;;  %v18_v3 = vmul.f32 -597.3451, %v8_v0 }
   0x3   :  { %v19_v4 = vmul.f32 -8.556338, %v8_v0  ;;  %v24_v5 = vmul.f32 -1.0563381, %v8_v0  ;;  %v30_v13 = vrot.slane %v8_v0, 2  ;;  %v38_v16 = vrot.slane %v8_v0, 6 }
   0x4   :  { %v12_v6 = vrot.slane %v10_v2, 2  ;;  %v15_v7 = vrot.slane %v10_v2, 3 }
   0x5   :  { %v21_v8 = vrot.slane %v19_v4, 2  ;;  %v26_v9 = vrot.slane %v24_v5, 3 }
   0x6   :  { %v14_v10 = vadd.f32 %v12_v6, %v9_v1 }
   0x7   :  { %v23_v11 = vadd.f32 %v21_v8, %v18_v3 }
   0x8   :  { %v17_v12 = vadd.f32 %v15_v7, %v14_v10  ;;  %v41_v18 = vrot.slane %v14_v10, 3 }
   0x9   :  { %v28_v14 = vadd.f32 %v26_v9, %v23_v11  ;;  %v44_v20 = vrot.slane %v23_v11, 2 }
   0xa   :  { %v33_v15 = vrot.slane %v17_v12, 7 }
   0xb   :  { %v36_v17 = vrot.slane %v28_v14, 6 }
   0xc   :  { %v47_v19 = vsel %vm46_vm0, %v30_v13, %v33_v15 }
   0xd   :  { %v49_v21 = vsel %vm48_vm1, %v47_v19, %v36_v17 }
   0xe   :  { %v51_v22 = vsel %vm50_vm2, %v49_v21, %v38_v16 }
   0xf   :  { %v53_v23 = vsel %vm52_vm3, %v51_v22, %v38_v16 }
  0x10   :  { %v55_v24 = vsel %vm54_vm4, %v53_v23, %v41_v18 }
  0x11   :  { %v57_v25 = vsel %vm56_vm5, %v55_v24, %v44_v20 }
  0x12   :  { %58 = vst [vmem:[%s80_s1] sm:$0xff] %v57_v25 }

</bundles_post_ra>
